<compile_context>
chip_gen: v7x
topology: tpu7x:2x2x1
jax: 0.10.0
libtpu: 0.0.40
codegen_flags: <defaults>
</compile_context>

<pallas_src>
import functools
import math

import jax
import jax.numpy as jnp
from jax.experimental import pallas as pl
from jax.experimental.pallas import tpu as pltpu

EPS = 1e-5  # torch.nn.GroupNorm default


# --------------------------------------------------------------------------------------
# Generation-aware helpers
# --------------------------------------------------------------------------------------
def _device_kind():
    try:
        devs = jax.devices()
        return devs[0].device_kind.lower() if devs else ""
    except Exception:
        return ""


def _vmem_capacity_bytes():
    try:
        cap = getattr(pltpu.get_tpu_info(), "vmem_capacity_bytes", None)
        if cap:
            return int(cap)
    except Exception:
        pass
    kind = _device_kind()
    return (64 << 20) if ("v7" in kind or "7x" in kind) else (128 << 20)


def _vmem_limit(est_bytes):
    # ~75% of physical VMEM: ~96 MiB on v5e/v6e (128 MiB), ~48 MiB on v7x (64 MiB),
    # leaving headroom for Mosaic internal scratch / semaphores / double buffers.
    ceiling = (_vmem_capacity_bytes() * 3) // 4
    want = max((int(est_bytes) * 3) // 2, 32 << 20)   # 1.5x safety over static estimate
    return int(min(want, ceiling))


def _pick_tile(s, prefs):
    """Largest preferred tile that divides S and is a 128-multiple, else full S."""
    for p in prefs:
        if p % 128 == 0 and s % p == 0:
            return p
    return s


# --------------------------------------------------------------------------------------
# Kernel 1a: GroupNorm statistics, tiled over S.
# --------------------------------------------------------------------------------------
def _gn_stats_kernel(x_ref, gamma_ref, beta_ref, gavg_ref,
                     scale_ref, shift_ref, s1_sc, s2_sc):
    t = pl.program_id(1)

    @pl.when(t == 0)
    def _():
        s1_sc[...] = jnp.zeros_like(s1_sc)
        s2_sc[...] = jnp.zeros_like(s2_sc)

    x = x_ref[0].astype(jnp.float32)                          # (C, TS)
    s1_sc[...] += jnp.sum(x, axis=1, keepdims=True)           # (C, 1) running sum
    s2_sc[...] += jnp.sum(x * x, axis=1, keepdims=True)       # (C, 1) running sum of squares

    @pl.when(t == pl.num_programs(1) - 1)
    def _():
        # group-average of the per-channel moments: one tiny (C,C)@(C,1) matmul per moment,
        # executed once per sample (not per S tile).
        mean = jnp.dot(gavg_ref[...], s1_sc[...], preferred_element_type=jnp.float32)
        ex2 = jnp.dot(gavg_ref[...], s2_sc[...], preferred_element_type=jnp.float32)
        # TODO(synk): one-pass E[x^2]-E[x]^2 can cancel when |mean| >> std; switch to a
        #             shifted/two-pass variance if tighter parity with PyTorch is needed.
        var = jnp.maximum(ex2 - mean * mean, 0.0)
        scl = jax.lax.rsqrt(var + EPS) * gamma_ref[...]
        scale_ref[0] = scl                                     # (C, 1)
        shift_ref[0] = beta_ref[...] - mean * scl              # (C, 1)


# --------------------------------------------------------------------------------------
# Kernel 1b: normalize + QKV projection, tiled over S (fully parallel).
# --------------------------------------------------------------------------------------
def _gn_qkv_kernel(x_ref, scale_ref, shift_ref, wqkv_ref, bqkv_ref,
                   q_ref, kt_ref, v_ref):
    c = q_ref.shape[1]
    x = x_ref[0].astype(jnp.float32)                           # (C, TS)
    xn = x * scale_ref[0] + shift_ref[0]                       # GroupNorm affine, f32

    # Conv1d k=1 == matmul; bf16 MXU operands, f32 accumulate. q rows pre-scaled by 1/sqrt(C).
    qkv = jnp.dot(wqkv_ref[...], xn.astype(jnp.bfloat16),
                  preferred_element_type=jnp.float32) + bqkv_ref[...]   # (3C, TS)

    q_ref[0] = qkv[:c].astype(q_ref.dtype)                     # (C, TS)
    v_ref[0] = qkv[2 * c:].astype(v_ref.dtype)                 # (C, TS)
    # K emitted pre-transposed (lane-dense along C) so kernel 2's QK^T matmul is the natural
    # (M,K)x(K,N) MXU form; the XLU transpose runs once per S tile here instead of once per
    # (q-tile x kv-step) in the flash loop.
    kt_ref[0] = qkv[c:2 * c].astype(kt_ref.dtype).T            # (TS, C)


# --------------------------------------------------------------------------------------
# Kernel 2: flash attention (online softmax) + output projection + residual.
# K^T / V are full-S VMEM-resident per sample; KV step is an in-kernel slice.
# --------------------------------------------------------------------------------------
def _flash_attn_out_kernel(q_ref, kt_ref, v_ref, xres_ref, wout_ref, bout_ref,
                           o_ref, m_sc, l_sc, acc_sc, *, tk, use_bf16_exp):
    kv = pl.program_id(2)

    @pl.when(kv == 0)
    def _():
        m_sc[...] = jnp.full_like(m_sc, -jnp.inf)
        l_sc[...] = jnp.zeros_like(l_sc)
        acc_sc[...] = jnp.zeros_like(acc_sc)

    off = pl.multiple_of(kv * tk, tk)
    q = q_ref[0]                                   # (C, TQ) bf16, 1/sqrt(C) pre-folded
    k_t = kt_ref[0, pl.ds(off, tk), :]             # (TK, C) bf16, resident per sample
    v = v_ref[0, :, pl.ds(off, tk)]                # (C, TK) bf16, resident per sample

    # scores^T (TK, TQ): natural (M,K)x(K,N) MXU form thanks to the pre-transposed K.
    s_t = jnp.dot(k_t, q, preferred_element_type=jnp.float32)
    m_prev = m_sc[...]                                                  # (1, TQ)
    m_new = jnp.maximum(m_prev, jnp.max(s_t, axis=0, keepdims=True))    # (1, TQ)
    alpha = jnp.exp(m_prev - m_new)                                     # (1, TQ) f32

    if use_bf16_exp:
        # v6e/v7x: bf16 EUP path; p is consumed in bf16 by the PV matmul anyway.
        p_mm = jnp.exp((s_t - m_new).astype(jnp.bfloat16))              # (TK, TQ) bf16
        p_sum = jnp.sum(p_mm.astype(jnp.float32), axis=0, keepdims=True)
    else:
        # v5e: no bf16 VPU/EUP path — keep exp in f32.
        p = jnp.exp(s_t - m_new)
        p_sum = jnp.sum(p, axis=0, keepdims=True)
        p_mm = p.astype(jnp.bfloat16)

    l_sc[...] = alpha * l_sc[...] + p_sum
    acc_sc[...] = alpha * acc_sc[...] + jnp.dot(v, p_mm, preferred_element_type=jnp.float32)
    m_sc[...] = m_new

    @pl.when(kv == pl.num_programs(2) - 1)
    def _():
        # deferred softmax normalization (EUP reciprocal, ~free bundle slot)
        att = acc_sc[...] * pl.reciprocal(l_sc[...], approx=True)       # (C, TQ)
        y = jnp.dot(wout_ref[...], att.astype(jnp.bfloat16),
                    preferred_element_type=jnp.float32) + bout_ref[...] # (C, TQ)
        # residual uses the PRE-norm input
        o_ref[0] = (y + xres_ref[0].astype(jnp.float32)).astype(o_ref.dtype)


# --------------------------------------------------------------------------------------
# Wrapper
# --------------------------------------------------------------------------------------
def attention_block(x_nchw, params, num_groups=32, ts=None, tq=None, tk=None):
    b, c, h, w = x_nchw.shape
    s = h * w
    cg = c // num_groups
    itm = x_nchw.dtype.itemsize

    # NCHW -> (B, C, S): pure reshape, no HBM transpose round-trips.
    x_bcs = x_nchw.reshape(b, c, s)

    ts = ts or _pick_tile(s, (512, 256, 128))          # kernel-1 S tile
    tq = tq or _pick_tile(s, (256, 128))               # 256 fills the 256^2 MXU on v6e/v7x
    tk = tk or _pick_tile(s, (256, 128))

    kind = _device_kind()
    use_bf16_exp = ("v6" in kind) or ("v7" in kind) or ("7x" in kind)

    # ---- parameter prep (tiny, one-time) ----
    gamma = params["gamma"].reshape(c, 1).astype(jnp.float32)
    beta = params["beta"].reshape(c, 1).astype(jnp.float32)
    gid = jnp.arange(c) // cg
    gavg = (gid[:, None] == gid[None, :]).astype(jnp.float32) / float(cg * s)    # (C, C)
    w_qkv = params["w_qkv"].reshape(3 * c, c).astype(jnp.float32)
    b_qkv = params["b_qkv"].reshape(3 * c, 1).astype(jnp.float32)
    scale = 1.0 / math.sqrt(c)                       # fold SDPA scale into q projection
    w_qkv = w_qkv.at[:c].multiply(scale)
    b_qkv = b_qkv.at[:c].multiply(scale)
    w_qkv = w_qkv.astype(jnp.bfloat16)
    w_out = params["w_out"].reshape(c, c).astype(jnp.bfloat16)
    b_out = params["b_out"].reshape(c, 1).astype(jnp.float32)

    full2 = lambda i, t: (0, 0)
    full3 = lambda i, j, k: (0, 0)

    # ---- kernel 1a: GroupNorm statistics ----
    est_a = 2 * c * ts * itm + 3 * c * ts * 4 + c * c * 4 + 16 * c * 4
    gn_scale, gn_shift = pl.pallas_call(
        _gn_stats_kernel,
        out_shape=(jax.ShapeDtypeStruct((b, c, 1), jnp.float32),
                   jax.ShapeDtypeStruct((b, c, 1), jnp.float32)),
        grid_spec=pltpu.PrefetchScalarGridSpec(
            num_scalar_prefetch=0,
            grid=(b, s // ts),
            in_specs=[
                pl.BlockSpec((1, c, ts), lambda i, t: (i, 0, t)),   # x tile
                pl.BlockSpec((c, 1), full2),                        # gamma
                pl.BlockSpec((c, 1), full2),                        # beta
                pl.BlockSpec((c, c), full2),                        # group-average matrix
            ],
            out_specs=[pl.BlockSpec((1, c, 1), lambda i, t: (i, 0, 0)),
                       pl.BlockSpec((1, c, 1), lambda i, t: (i, 0, 0))],
            scratch_shapes=[pltpu.VMEM((c, 1), jnp.float32),        # running sum
                            pltpu.VMEM((c, 1), jnp.float32)],       # running sum of squares
        ),
        compiler_params=pltpu.CompilerParams(
            dimension_semantics=("parallel", "arbitrary"),
            vmem_limit_bytes=_vmem_limit(est_a)),
    )(x_bcs, gamma, beta, gavg)

    # ---- kernel 1b: normalize + QKV projection (K emitted pre-transposed) ----
    est_b = (2 * c * ts * itm                          # x tile (double-buffered)
             + 2 * 3 * c * c * 2                       # W_qkv
             + 2 * (3 * c * ts * 4 + 3 * c * ts * 2)   # xn/qkv f32 + bf16 temporaries
             + 3 * 2 * c * ts * 2                      # q/kt/v output blocks
             + c * ts * 2 + 8 * c * 4)                 # transpose temp + scale/shift/bias
    q_bcs, kt_bsc, v_bcs = pl.pallas_call(
        _gn_qkv_kernel,
        out_shape=(jax.ShapeDtypeStruct((b, c, s), jnp.bfloat16),    # Q  (B, C, S)
                   jax.ShapeDtypeStruct((b, s, c), jnp.bfloat16),    # K^T (B, S, C)
                   jax.ShapeDtypeStruct((b, c, s), jnp.bfloat16)),   # V  (B, C, S)
        grid_spec=pltpu.PrefetchScalarGridSpec(
            num_scalar_prefetch=0,
            grid=(b, s // ts),
            in_specs=[
                pl.BlockSpec((1, c, ts), lambda i, t: (i, 0, t)),    # x tile
                pl.BlockSpec((1, c, 1), lambda i, t: (i, 0, 0)),     # per-channel scale
                pl.BlockSpec((1, c, 1), lambda i, t: (i, 0, 0)),     # per-channel shift
                pl.BlockSpec((3 * c, c), full2),                     # W_qkv (q rows pre-scaled)
                pl.BlockSpec((3 * c, 1), full2),                     # b_qkv
            ],
            out_specs=[pl.BlockSpec((1, c, ts), lambda i, t: (i, 0, t)),
                       pl.BlockSpec((1, ts, c), lambda i, t: (i, t, 0)),
                       pl.BlockSpec((1, c, ts), lambda i, t: (i, 0, t))],
        ),
        compiler_params=pltpu.CompilerParams(
            dimension_semantics=("parallel", "parallel"),
            vmem_limit_bytes=_vmem_limit(est_b)),
    )(x_bcs, gn_scale, gn_shift, w_qkv, b_qkv)

    # ---- kernel 2: flash attention + out projection + residual ----
    est_2 = (2 * c * tq * 2                            # q tile
             + 2 * 2 * s * c * 2                       # K^T + V resident (double-buffered)
             + 2 * 2 * c * tq * itm                    # residual + output blocks
             + c * tq * 4 + 2 * tq * 4                 # acc / m / l scratch
             + 3 * tk * tq * 4                         # scores / p temporaries
             + 2 * c * c * 2 + 4 * c)                  # W_out, b_out
    kernel2 = functools.partial(_flash_attn_out_kernel, tk=tk, use_bf16_exp=use_bf16_exp)
    out_bcs = pl.pallas_call(
        kernel2,
        out_shape=jax.ShapeDtypeStruct((b, c, s), x_nchw.dtype),
        grid_spec=pltpu.PrefetchScalarGridSpec(
            num_scalar_prefetch=0,
            grid=(b, s // tq, s // tk),
            in_specs=[
                pl.BlockSpec((1, c, tq), lambda i, j, k: (i, 0, j)),  # q tile
                pl.BlockSpec((1, s, c), lambda i, j, k: (i, 0, 0)),   # K^T resident per sample
                pl.BlockSpec((1, c, s), lambda i, j, k: (i, 0, 0)),   # V resident per sample
                pl.BlockSpec((1, c, tq), lambda i, j, k: (i, 0, j)),  # residual (pre-norm x)
                pl.BlockSpec((c, c), full3),                          # W_out
                pl.BlockSpec((c, 1), full3),                          # b_out
            ],
            out_specs=pl.BlockSpec((1, c, tq), lambda i, j, k: (i, 0, j)),
            scratch_shapes=[
                pltpu.VMEM((1, tq), jnp.float32),     # running max
                pltpu.VMEM((1, tq), jnp.float32),     # running denominator
                pltpu.VMEM((c, tq), jnp.float32),     # output accumulator
            ],
        ),
        compiler_params=pltpu.CompilerParams(
            dimension_semantics=("parallel", "parallel", "arbitrary"),
            vmem_limit_bytes=_vmem_limit(est_2)),
    )(q_bcs, kt_bsc, v_bcs, x_bcs, w_out, b_out)

    # (B, C, S) -> NCHW is again a pure reshape.
    return out_bcs.reshape(b, c, h, w)


# --------------------------------------------------------------------------------------
# Pure-JAX reference mirroring the PyTorch forward, for validation.
# --------------------------------------------------------------------------------------
def attention_block_ref(x_nchw, params, num_groups=32):
    b, c, h, w = x_nchw.shape
    s = h * w
    xin = x_nchw.reshape(b, c, s).astype(jnp.float32)               # (B, C, S)
    xg = xin.reshape(b, num_groups, c // num_groups, s)
    mu = jnp.mean(xg, axis=(2, 3), keepdims=True)
    var = jnp.mean((xg - mu) ** 2, axis=(2, 3), keepdims=True)
    xn = ((xg - mu) / jnp.sqrt(var + EPS)).reshape(b, c, s)
    xn = xn * params["gamma"].reshape(1, c, 1) + params["beta"].reshape(1, c, 1)
    qkv = jnp.einsum("oc,bcs->bos", params["w_qkv"].reshape(3 * c, c), xn) \
        + params["b_qkv"].reshape(1, 3 * c, 1)
    qkv = jnp.transpose(qkv, (0, 2, 1))                              # (B, S, 3C)
    q, k, v = qkv[..., :c], qkv[..., c:2 * c], qkv[..., 2 * c:]
    scores = jnp.einsum("bqd,bkd->bqk", q, k) / math.sqrt(c)
    p = jax.nn.softmax(scores, axis=-1)
    att = jnp.einsum("bqk,bkd->bqd", p, v)                           # (B, S, C)
    att = jnp.transpose(att, (0, 2, 1))                              # (B, C, S)
    y = jnp.einsum("oc,bcs->bos", params["w_out"].reshape(c, c), att) \
        + params["b_out"].reshape(1, c, 1)
    return (y + xin).reshape(b, c, h, w)


if __name__ == "__main__":
    def run_case(b, c, h, w):
        key = jax.random.PRNGKey(0)
        k_x, k_g, k_b, k_wq, k_bq, k_wo, k_bo = jax.random.split(key, 7)
        x = jax.random.normal(k_x, (b, c, h, w), dtype=jnp.float32)
        params = {
            "gamma": 1.0 + 0.1 * jax.random.normal(k_g, (c,), dtype=jnp.float32),
            "beta": 0.1 * jax.random.normal(k_b, (c,), dtype=jnp.float32),
            # Conv1d(C, 3C, 1): weight (3C, C, 1) -> stored as (3C, C)
            "w_qkv": (1.0 / math.sqrt(c)) * jax.random.normal(k_wq, (3 * c, c), dtype=jnp.float32),
            "b_qkv": 0.05 * jax.random.normal(k_bq, (3 * c,), dtype=jnp.float32),
            # Conv1d(C, C, 1): weight (C, C, 1) -> stored as (C, C)
            "w_out": (1.0 / math.sqrt(c)) * jax.random.normal(k_wo, (c, c), dtype=jnp.float32),
            "b_out": 0.05 * jax.random.normal(k_bo, (c,), dtype=jnp.float32),
        }
        out = jax.block_until_ready(attention_block(x, params))
        ref = jax.block_until_ready(attention_block_ref(x, params))
        assert out.shape == (b, c, h, w) and out.dtype == x.dtype
        # bf16 MXU / exp operands -> compare against pure-f32 reference at bf16 tolerance
        assert jnp.allclose(out, ref, rtol=5e-2, atol=5e-2), \
            f"max abs err {jnp.max(jnp.abs(out - ref))}"

    # GroupNorm(32, C) requires C % 32 == 0.
    # Case 1: S=1024 -> exercises S-tiled GroupNorm (TS=512) and a 4x4 flash KV loop at 256.
    run_case(2, 32, 32, 32)
    # Case 2: B=1, C=64, S=256 -> single-tile fallback paths (full-S tiles, 1 KV step).
    run_case(1, 64, 16, 16)
    print("KERNEL_OK")
</pallas_src>

<mosaic_0001>
module attributes {stable_mosaic.version = 11 : i64} {
  func.func @_gn_stats_kernel(%arg0: i32, %arg1: i32, %arg2: memref<1x32x512xf32, #tpu.memory_space<vmem>>, %arg3: memref<32x1xf32, #tpu.memory_space<vmem>>, %arg4: memref<32x1xf32, #tpu.memory_space<vmem>>, %arg5: memref<32x32xf32, #tpu.memory_space<vmem>>, %arg6: memref<1x32x1xf32, #tpu.memory_space<vmem>>, %arg7: memref<1x32x1xf32, #tpu.memory_space<vmem>>, %arg8: memref<32x1xf32, #tpu.memory_space<vmem>>, %arg9: memref<32x1xf32, #tpu.memory_space<vmem>>) attributes {dimension_semantics = [#tpu.dimension_semantics<parallel>, #tpu.dimension_semantics<arbitrary>], iteration_bounds = array<i64: 2, 2>, scalar_prefetch = 0 : i64, scratch_operands = 2 : i64, tpu.core_type = #tpu.core_type<tc>, window_params = [{transform_indices = @transform_0, window_bounds = array<i64: 1, 32, 512>}, {pipeline_mode = #tpu.pipeline_mode<synchronous>, transform_indices = @transform_1, window_bounds = array<i64: 32, 1>}, {pipeline_mode = #tpu.pipeline_mode<synchronous>, transform_indices = @transform_2, window_bounds = array<i64: 32, 1>}, {pipeline_mode = #tpu.pipeline_mode<synchronous>, transform_indices = @transform_3, window_bounds = array<i64: 32, 32>}, {transform_indices = @transform_4, window_bounds = array<i64: 1, 32, 1>}, {transform_indices = @transform_5, window_bounds = array<i64: 1, 32, 1>}]} {
    %c0_i32 = arith.constant 0 : i32
    %0 = arith.cmpi eq, %arg1, %c0_i32 : i32
    %1 = arith.extui %0 : i1 to i32
    %c0_i32_0 = arith.constant 0 : i32
    %2 = arith.cmpi ne, %1, %c0_i32_0 : i32
    scf.if %2 {
      %cst_13 = arith.constant 0.000000e+00 : f32
      %19 = vector.broadcast %cst_13 : f32 to vector<32x1xf32>
      %c0_14 = arith.constant 0 : index
      %c0_15 = arith.constant 0 : index
      %20 = vector.load %arg8[%c0_14, %c0_15] : memref<32x1xf32, #tpu.memory_space<vmem>>, vector<32x1xf32>
      tpu.vector_store %arg8[%c0_14, %c0_15], %19 {strides = array<i32>} : memref<32x1xf32, #tpu.memory_space<vmem>>, vector<32x1xf32>,
      %cst_16 = arith.constant 0.000000e+00 : f32
      %21 = vector.broadcast %cst_16 : f32 to vector<32x1xf32>
      %c0_17 = arith.constant 0 : index
      %c0_18 = arith.constant 0 : index
      %22 = vector.load %arg9[%c0_17, %c0_18] : memref<32x1xf32, #tpu.memory_space<vmem>>, vector<32x1xf32>
      tpu.vector_store %arg9[%c0_17, %c0_18], %21 {strides = array<i32>} : memref<32x1xf32, #tpu.memory_space<vmem>>, vector<32x1xf32>,
    } else {
    }
    %c0 = arith.constant 0 : index
    %c0_1 = arith.constant 0 : index
    %c0_2 = arith.constant 0 : index
    %3 = vector.load %arg2[%c0, %c0_1, %c0_2] : memref<1x32x512xf32, #tpu.memory_space<vmem>>, vector<1x32x512xf32>
    %4 = vector.shape_cast %3 : vector<1x32x512xf32> to vector<32x512xf32>
    %c0_3 = arith.constant 0 : index
    %c0_4 = arith.constant 0 : index
    %5 = vector.load %arg8[%c0_3, %c0_4] : memref<32x1xf32, #tpu.memory_space<vmem>>, vector<32x1xf32>
    %cst = arith.constant dense<0.000000e+00> : vector<32xf32>
    %6 = vector.multi_reduction <add>, %4, %cst [1] : vector<32x512xf32> to vector<32xf32>
    %7 = vector.shape_cast %6 : vector<32xf32> to vector<32x1xf32>
    %8 = arith.addf %5, %7 : vector<32x1xf32>
    %c0_5 = arith.constant 0 : index
    %c0_6 = arith.constant 0 : index
    %9 = vector.load %arg8[%c0_5, %c0_6] : memref<32x1xf32, #tpu.memory_space<vmem>>, vector<32x1xf32>
    tpu.vector_store %arg8[%c0_5, %c0_6], %8 {strides = array<i32>} : memref<32x1xf32, #tpu.memory_space<vmem>>, vector<32x1xf32>,
    %c0_7 = arith.constant 0 : index
    %c0_8 = arith.constant 0 : index
    %10 = vector.load %arg9[%c0_7, %c0_8] : memref<32x1xf32, #tpu.memory_space<vmem>>, vector<32x1xf32>
    %11 = arith.mulf %4, %4 : vector<32x512xf32>
    %cst_9 = arith.constant dense<0.000000e+00> : vector<32xf32>
    %12 = vector.multi_reduction <add>, %11, %cst_9 [1] : vector<32x512xf32> to vector<32xf32>
    %13 = vector.shape_cast %12 : vector<32xf32> to vector<32x1xf32>
    %14 = arith.addf %10, %13 : vector<32x1xf32>
    %c0_10 = arith.constant 0 : index
    %c0_11 = arith.constant 0 : index
    %15 = vector.load %arg9[%c0_10, %c0_11] : memref<32x1xf32, #tpu.memory_space<vmem>>, vector<32x1xf32>
    tpu.vector_store %arg9[%c0_10, %c0_11], %14 {strides = array<i32>} : memref<32x1xf32, #tpu.memory_space<vmem>>, vector<32x1xf32>,
    %c1_i32 = arith.constant 1 : i32
    %16 = arith.cmpi eq, %arg1, %c1_i32 : i32
    %17 = arith.extui %16 : i1 to i32
    %c0_i32_12 = arith.constant 0 : i32
    %18 = arith.cmpi ne, %17, %c0_i32_12 : i32
    scf.if %18 {
      %c0_13 = arith.constant 0 : index
      %c0_14 = arith.constant 0 : index
      %19 = vector.load %arg5[%c0_13, %c0_14] : memref<32x32xf32, #tpu.memory_space<vmem>>, vector<32x32xf32>
      %c0_15 = arith.constant 0 : index
      %c0_16 = arith.constant 0 : index
      %20 = vector.load %arg8[%c0_15, %c0_16] : memref<32x1xf32, #tpu.memory_space<vmem>>, vector<32x1xf32>
      %cst_17 = arith.constant dense<0.000000e+00> : vector<32x1xf32>
      %21 = tpu.matmul %19, %20, %cst_17 {dimension_numbers = #tpu.dot_dimension_numbers<[1], [0], [0], [1], [0, 0, 1, 1], [], []>} : vector<32x32xf32>, vector<32x1xf32>, vector<32x1xf32> -> vector<32x1xf32>
      %c0_18 = arith.constant 0 : index
      %c0_19 = arith.constant 0 : index
      %22 = vector.load %arg5[%c0_18, %c0_19] : memref<32x32xf32, #tpu.memory_space<vmem>>, vector<32x32xf32>
      %c0_20 = arith.constant 0 : index
      %c0_21 = arith.constant 0 : index
      %23 = vector.load %arg9[%c0_20, %c0_21] : memref<32x1xf32, #tpu.memory_space<vmem>>, vector<32x1xf32>
      %cst_22 = arith.constant dense<0.000000e+00> : vector<32x1xf32>
      %24 = tpu.matmul %22, %23, %cst_22 {dimension_numbers = #tpu.dot_dimension_numbers<[1], [0], [0], [1], [0, 0, 1, 1], [], []>} : vector<32x32xf32>, vector<32x1xf32>, vector<32x1xf32> -> vector<32x1xf32>
      %25 = arith.mulf %21, %21 : vector<32x1xf32>
      %26 = arith.subf %24, %25 : vector<32x1xf32>
      %cst_23 = arith.constant 0.000000e+00 : f32
      %27 = vector.broadcast %cst_23 : f32 to vector<32x1xf32>
      %28 = arith.maximumf %26, %27 : vector<32x1xf32>
      %cst_24 = arith.constant 9.99999974E-6 : f32
      %29 = vector.broadcast %cst_24 : f32 to vector<32x1xf32>
      %30 = arith.addf %28, %29 : vector<32x1xf32>
      %31 = math.rsqrt %30 : vector<32x1xf32>
      %c0_25 = arith.constant 0 : index
      %c0_26 = arith.constant 0 : index
      %32 = vector.load %arg3[%c0_25, %c0_26] : memref<32x1xf32, #tpu.memory_space<vmem>>, vector<32x1xf32>
      %33 = arith.mulf %31, %32 : vector<32x1xf32>
      %c0_27 = arith.constant 0 : index
      %c0_28 = arith.constant 0 : index
      %c0_29 = arith.constant 0 : index
      %34 = vector.load %arg6[%c0_27, %c0_28, %c0_29] : memref<1x32x1xf32, #tpu.memory_space<vmem>>, vector<1x32x1xf32>
      %35 = vector.shape_cast %34 : vector<1x32x1xf32> to vector<32x1xf32>
      %36 = vector.shape_cast %33 : vector<32x1xf32> to vector<1x32x1xf32>
      tpu.vector_store %arg6[%c0_27, %c0_28, %c0_29], %36 {strides = array<i32>} : memref<1x32x1xf32, #tpu.memory_space<vmem>>, vector<1x32x1xf32>,
      %c0_30 = arith.constant 0 : index
      %c0_31 = arith.constant 0 : index
      %37 = vector.load %arg4[%c0_30, %c0_31] : memref<32x1xf32, #tpu.memory_space<vmem>>, vector<32x1xf32>
      %38 = arith.mulf %21, %33 : vector<32x1xf32>
      %39 = arith.subf %37, %38 : vector<32x1xf32>
      %c0_32 = arith.constant 0 : index
      %c0_33 = arith.constant 0 : index
      %c0_34 = arith.constant 0 : index
      %40 = vector.load %arg7[%c0_32, %c0_33, %c0_34] : memref<1x32x1xf32, #tpu.memory_space<vmem>>, vector<1x32x1xf32>
      %41 = vector.shape_cast %40 : vector<1x32x1xf32> to vector<32x1xf32>
      %42 = vector.shape_cast %39 : vector<32x1xf32> to vector<1x32x1xf32>
      tpu.vector_store %arg7[%c0_32, %c0_33, %c0_34], %42 {strides = array<i32>} : memref<1x32x1xf32, #tpu.memory_space<vmem>>, vector<1x32x1xf32>,
    } else {
    }
    return
  }
  func.func @transform_0(%arg0: i32, %arg1: i32) -> (i32, i32, i32) {
    %c0_i32 = arith.constant 0 : i32
    %c0_i32_0 = arith.constant 0 : i32
    return %arg0, %c0_i32, %arg1 : i32, i32, i32
  }
  func.func @transform_1(%arg0: i32, %arg1: i32) -> (i32, i32) {
    %c0_i32 = arith.constant 0 : i32
    %c0_i32_0 = arith.constant 0 : i32
    %c0_i32_1 = arith.constant 0 : i32
    return %c0_i32, %c0_i32_0 : i32, i32
  }
  func.func @transform_2(%arg0: i32, %arg1: i32) -> (i32, i32) {
    %c0_i32 = arith.constant 0 : i32
    %c0_i32_0 = arith.constant 0 : i32
    %c0_i32_1 = arith.constant 0 : i32
    return %c0_i32, %c0_i32_0 : i32, i32
  }
  func.func @transform_3(%arg0: i32, %arg1: i32) -> (i32, i32) {
    %c0_i32 = arith.constant 0 : i32
    %c0_i32_0 = arith.constant 0 : i32
    %c0_i32_1 = arith.constant 0 : i32
    return %c0_i32, %c0_i32_0 : i32, i32
  }
  func.func @transform_4(%arg0: i32, %arg1: i32) -> (i32, i32, i32) {
    %c0_i32 = arith.constant 0 : i32
    %c0_i32_0 = arith.constant 0 : i32
    %c0_i32_1 = arith.constant 0 : i32
    return %arg0, %c0_i32, %c0_i32_0 : i32, i32, i32
  }
  func.func @transform_5(%arg0: i32, %arg1: i32) -> (i32, i32, i32) {
    %c0_i32 = arith.constant 0 : i32
    %c0_i32_0 = arith.constant 0 : i32
    %c0_i32_1 = arith.constant 0 : i32
    return %arg0, %c0_i32, %c0_i32_0 : i32, i32, i32
  }
}

</mosaic_0001>

<bundles_post_ra>
// kernel: tpu_custom_call.1
= control target key start
LH: loop header
LB: loop body
LE: loop exit
PB: predicated region body
PF: predicated region fallthrough
CT: control target
= control target key end

     0   :  { %s1294_s0 = inlined_call_operand.hbm [shape: f32[2,32,1024], index: 0, kind: input, shape index: {}]   ;;  %s1295_s1 = inlined_call_operand.vmem [shape: f32[32,1], index: 1, kind: input, shape index: {}]   ;;  %s1296_s2 = inlined_call_operand.vmem [shape: f32[32,1], index: 2, kind: input, shape index: {}]   ;;  %s1297_s3 = inlined_call_operand.vmem [shape: f32[32,32], index: 3, kind: input, shape index: {}]   ;;  %s1298_s4 = inlined_call_operand.vmem [shape: f32[2,32,1], index: 4, kind: output, shape index: {0}]   ;;  %s1299_s5 = inlined_call_operand.vmem [shape: f32[2,32,1], index: 5, kind: output, shape index: {1}]  }
   0x1   :  { %1302 = sst [smem:[#allocation8_spill]] %s1296_s2 }
   0x2   :  { %11 = vsyncpa [#allocation5], 0 }
   0x3   :  { %13 = vsyncpa [#allocation5 + $0x1], 0  ;;  %s1050_s18 = smov 0   ;;  %s1052_s19 = smov 0  }
   0x4   :  { %s1054_s20 = smov 0   ;;  %s1056_s21 = smov 0  }
   0x5   :  { %s1058_s22 = smov 0   ;;  %s1060_s23 = smov 0  }
   0x6   :  { %s1062_s24 = smov 0   ;;  %s1064_s25 = smov 0  }
   0x7 LB: > { %s746_s26 = sadd.s32 4294967295, %s1013_s25   ;;  %s28_s27 = sadd.s32 1, %s1005_s23  ;;  %s1013_s25 = sphi %s1064_s25, %s19_s25   ;;  %s1009_s24 = sphi %s1062_s24, %s1315_s24   ;;  %s1005_s23 = sphi %s1060_s23, %s1314_s23   ;;  %s1001_s22 = sphi %s1058_s22, %s1313_s22   ;;  %s997_s21 = sphi %s1056_s21, %s1312_s21   ;;  %s993_s20 = sphi %s1054_s20, %s1311_s20   ;;  %s989_s19 = sphi %s1052_s19, %s1310_s19   ;;  %s985_s18 = sphi %s1050_s18, %s1309_s18  }
   0x8   : > { %p29_p0 = scmp.ge.s32.totalorder %s28_s27, 2  ;;  %s31_s28 = sadd.s32 1, %s1009_s24 }
   0x9   : > { %s40_s29 = sadd.s32 1, %s993_s20  ;;  %p47_p1 = scmp.ne.s32.totalorder %s993_s20, %s989_s19 }
   0xa   : > { %s1317_s27 = smov (%p29_p0, %s28_s27), 0  ;;  %s1319_s28 = smov (!%p29_p0, %s31_s28), %s1009_s24 }
   0xb   : > { %1303 = sst [smem:[#allocation7_spill]] %s1317_s27  ;;  %s36_s30 = ssub.s32 %s1005_s23, %s1317_s27 }
   0xc   : > { %p48_p2 = scmp.eq.s32.totalorder %s1013_s25, 0  ;;  %p33_p3 = scmp.ge.s32.totalorder %s1319_s28, 2 }
   0xd   : > { %p53_p4 = scmp.ne.s32.totalorder %s989_s19, %s985_s18  ;;  %p54_p6 = scmp.eq.s32.totalorder %s746_s26, 0 }
   0xe   : > { %p1101_p5 = por %p48_p2, %p47_p1  ;;  %s1321_s28 = smov (%p33_p3, %s1319_s28), 0 }
   0xf   : > { %p1107_p7 = por %p54_p6, %p53_p4  ;;  %s35_s8 = ssub.s32 %s1009_s24, %s1321_s28 }
  0x10   : > { %p840_p8 = scmp.lt.s32.totalorder %s1013_s25, 4  ;;  %s37_s9 = sor.u32 %s36_s30, %s35_s8 }
  0x11   : > { %s201_s10 = sand.u32 1, %s993_s20   ;;  %p38_p9 = scmp.eq.s32.totalorder %s37_s9, 0 }
  0x12   : > { %s750_s11 = sshll.u32 %s201_s10, 7  ;;  %s751_s12 = sshll.u32 %s1005_s23, 2 }
  0x13   : > { %s1117_s13 = scalar_select %p38_p9, %s993_s20, %s40_s29  }
  0x14   : > { %s752_s14 = sshll.u32 %s1009_s24, 5  ;;  %s205_s16 = scalar_lea.vmem [#allocation4], %s750_s11 }
  0x15   : > { %s211_s15 = sadd.s32 %s752_s14, %s751_s12  ;;  %s214_s17 = sshll.u32 %s205_s16, 4  ;;  %s1120_s17 = int_to_ptr.vmem [resolvable:$true] %s214_s17 }
  0x16   : > { %s753_s18 = sshll.u32 %s211_s15, 7  ;;  %p1131_p10 = pnand %p840_p8, %p1101_p5 }
  0x17   : > { %s1125_s2 = scalar_lea.hbm %s1294_s0, %s753_s18  ;;  %s1135_s30 = scalar_lea.sflag [#allocation5], %s201_s10 }
  0x18   : > { %s917_s8 = scalar_lea.hbm %s1125_s2, 2048  ;;  %p919_p12 = pneg %p1131_p10 }
  0x19   : > { %p918_p11 = scmp.ne.s32.totalorder %s1125_s2, %s917_s8  ;;  %s922_s9 = scalar_lea.hbm %s1294_s0, 8192 }
  0x1a   : > { %p923_p1 = scmp.lt.u32.totalorder %s1125_s2, %s1294_s0  ;;  %p924_p2 = scmp.lt.u32.totalorder %s922_s9, %s917_s8 }
  0x1b   : > { %p920_p13 = pnand %p919_p12, %p918_p11  ;;  %p926_p4 = scmp.lt.u32.totalorder %s917_s8, %s1125_s2 }
  0x1c   : > { %p925_p3 = por %p924_p2, %p923_p1 }
  0x1d   : > { %p921_p0 = pneg %p920_p13 }
  0x1e   : > { %p927_p5 = por %p926_p4, %p925_p3 }
  0x20   : > { %p928_p6 = pnand %p927_p5, %p921_p0 }
  0x22   : > { %931 = shalt.err (!%p928_p6)
}
  0x23   : > { %s932_s10 = scalar_lea.vmem %s1120_s17, 2048  ;;  %s1015_s14 = smov [#allocation4]  }
  0x24   : > { %p933_p8 = scmp.ne.s32.totalorder %s1120_s17, %s932_s10  ;;  %s937_s15 = sshll.u32 %s1015_s14, 4  ;;  %s938_s15 = int_to_ptr.vmem [resolvable:$false] %s937_s15 }
  0x25   : > { %s939_s16 = scalar_lea.vmem %s938_s15, 4096  ;;  %p940_p13 = scmp.lt.s32.totalorder %s1120_s17, %s938_s15 }
  0x26   : > { %p935_p9 = pnand %p933_p8, %p919_p12  ;;  %p941_p1 = scmp.lt.s32.totalorder %s939_s16, %s932_s10 }
  0x28   : > { %p936_p11 = pneg %p935_p9  ;;  %p942_p2 = por %p941_p1, %p940_p13 }
  0x2a   : > { %p943_p3 = pnand %p942_p2, %p936_p11 }
  0x2c   : > { %946 = shalt.err (!%p943_p3)
}
  0x2d   : > { %s1016_s18 = smov 1024   ;;  %s1017_s26 = smov 512  }
  0x2e   : > { %s1018_s8 = smov 32   ;;  %p754_p12 = scmp.ge.s32.totalorder %s1013_s25, 1 }
  0x2f   : > { %839 = dma.hbm_to_vmem [thread:$0]  (!%p1131_p10), %s1125_s2, 2048, %s1120_s17, %s1135_s30, %s1016_s18, %s1017_s26, %s1018_s8  }
  0x30   : > { %p222_p0 = scmp.lt.s32.totalorder %s1013_s25, 5 }
  0x32   : > { %p223_p4 = pnand %p754_p12, %p222_p0 }
  0x33   : > { %s228_s27 = sand.u32 (!%p223_p4), 1, %s989_s19  }
  0x34   : > { %226 = sbr.rel (%p223_p4) target bundleno = 488 (0x1e8), region = 36  ;;  %s755_s6 = sshll.u32 (!%p223_p4), %s228_s27, 7 }
  0x35   : > { %s229_s9 = scalar_lea.sflag (!%p223_p4), [#allocation5], %s228_s27  ;;  %s1166_s11 = scalar_lea.vmem (!%p223_p4), [#allocation4], %s755_s6 }
  0x3b   : > { %980 = dma.done.wait (%p1107_p7), %s229_s9, 2048  }
  0x3c   : > { %982 = vsyncadd (%p1107_p7), %s229_s9, 4294965248  ;;  %p265_p5 = scmp.lt.s32.totalorder %s1001_s22, 1  ;;  %p760_p10 = scmp.ne.s32.totalorder %s997_s21, 0 }
  0x3d   : > { %vm279_vm0 = vcmask (!%p760_p10), 7168   ;;  %v1019_v0 = vmov (!%p760_p10), 0.0  }
  0x3e   : > { %s1323_s22 = smov (!%p265_p5, %s1001_s22), 1  ;;  %278 = sbr.rel (%p760_p10) target bundleno = 69 (0x45), region = 44 }
  0x3f   : > { %s772_s2 = sshll.u32 %s1323_s22, 5  ;;  %280 = vst.msk [vmem:[#allocation2] sm:$0xff] (!%p760_p10), %vm279_vm0, %v1019_v0  ;;  %281 = vst.msk [vmem:[#allocation2 + $0x8] sm:$0xff] (!%p760_p10), %vm279_vm0, %v1019_v0 }
  0x40   : > { %s1177_s30 = scalar_lea.vmem %s1298_s4, %s772_s2  ;;  %s1182_s14 = scalar_lea.vmem %s1299_s5, %s772_s2  ;;  %282 = vst.msk [vmem:[#allocation2 + $0x10] sm:$0xff] (!%p760_p10), %vm279_vm0, %v1019_v0  ;;  %283 = vst.msk [vmem:[#allocation2 + $0x18] sm:$0xff] (!%p760_p10), %vm279_vm0, %v1019_v0 }
  0x41   : > { %284 = vst.msk [vmem:[#allocation3] sm:$0xff] (!%p760_p10), %vm279_vm0, %v1019_v0  ;;  %285 = vst.msk [vmem:[#allocation3 + $0x8] sm:$0xff] (!%p760_p10), %vm279_vm0, %v1019_v0 }
  0x42   : > { %286 = vst.msk [vmem:[#allocation3 + $0x10] sm:$0xff] (!%p760_p10), %vm279_vm0, %v1019_v0  ;;  %287 = vst.msk [vmem:[#allocation3 + $0x18] sm:$0xff] (!%p760_p10), %vm279_vm0, %v1019_v0 }
  0x45 PF: > { %v296_v1 = vld [vmem:[%s1166_s11 + $0x40] sm:$0xff]  ;;  %v297_v2 = vld [vmem:[%s1166_s11 + $0x48] sm:$0xff]  ;;  %v298_v3 = vld [vmem:[%s1166_s11 + $0x50] sm:$0xff]  ;;  %vm332_vm1 = vcmask 7168   ;;  %p761_p7 = scmp.ne.s32.totalorder %s997_s21, 1 }
  0x46   : > { %v318_v4 = vadd.f32 %v297_v2, %v296_v1  ;;  %v349_v5 = vmul.f32 %v296_v1, %v296_v1  ;;  %v288_v6 = vld [vmem:[%s1166_s11] sm:$0xff]  ;;  %v289_v7 = vld [vmem:[%s1166_s11 + $0x8] sm:$0xff]  ;;  %v299_v8 = vld [vmem:[%s1166_s11 + $0x58] sm:$0xff]  ;;  %v350_v9 = vmul.f32 %v297_v2, %v297_v2  ;;  %v351_v16 = vmul.f32 %v298_v3, %v298_v3  ;;  %s1307_s29 = sld [smem:[#allocation8_spill]] (!%p761_p7) }
  0x47   : > { %v290_v10 = vld [vmem:[%s1166_s11 + $0x10] sm:$0xff]  ;;  %v308_v11 = vadd.f32 %v289_v7, %v288_v6  ;;  %v341_v12 = vmul.f32 %v288_v6, %v288_v6  ;;  %v342_v13 = vmul.f32 %v289_v7, %v289_v7  ;;  %v300_v14 = vld [vmem:[%s1166_s11 + $0x60] sm:$0xff]  ;;  %v291_v17 = vld [vmem:[%s1166_s11 + $0x18] sm:$0xff]  ;;  %v352_v52 = vmul.f32 %v299_v8, %v299_v8 }
  0x48   : > { %v319_v15 = vadd.f32 %v318_v4, %v298_v3  ;;  %v343_v18 = vmul.f32 %v290_v10, %v290_v10  ;;  %v301_v19 = vld [vmem:[%s1166_s11 + $0x68] sm:$0xff]  ;;  %v302_v20 = vld [vmem:[%s1166_s11 + $0x70] sm:$0xff]  ;;  %v353_v21 = vmul.f32 %v300_v14, %v300_v14  ;;  %v292_v24 = vld [vmem:[%s1166_s11 + $0x20] sm:$0xff]  ;;  %v344_v35 = vmul.f32 %v291_v17, %v291_v17 }
  0x49   : > { %v309_v22 = vadd.f32 %v308_v11, %v290_v10  ;;  %v323_v23 = vadd.f32 %v301_v19, %v300_v14  ;;  %v293_v25 = vld [vmem:[%s1166_s11 + $0x28] sm:$0xff]  ;;  %v294_v26 = vld [vmem:[%s1166_s11 + $0x30] sm:$0xff]  ;;  %v357_v27 = vadd.f32 %v342_v13, %v341_v12  ;;  %v354_v28 = vmul.f32 %v301_v19, %v301_v19  ;;  %v303_v30 = vld [vmem:[%s1166_s11 + $0x78] sm:$0xff] }
  0x4a   : > { %v320_v29 = vadd.f32 %v319_v15, %v299_v8  ;;  %v313_v31 = vadd.f32 %v293_v25, %v292_v24  ;;  %v345_v32 = vmul.f32 %v292_v24, %v292_v24  ;;  %v346_v33 = vmul.f32 %v293_v25, %v293_v25  ;;  %v295_v37 = vld [vmem:[%s1166_s11 + $0x38] sm:$0xff]  ;;  %v306_v57 = vld [vmem:[#allocation2 + $0x10] sm:$0xff]  ;;  %v304_v58 = vld [vmem:[#allocation2] sm:$0xff] }
  0x4b   : > { %v310_v34 = vadd.f32 %v309_v22, %v291_v17  ;;  %v324_v36 = vadd.f32 %v323_v23, %v302_v20  ;;  %v347_v38 = vmul.f32 %v294_v26, %v294_v26  ;;  %v348_v40 = vmul.f32 %v295_v37, %v295_v37  ;;  %v307_v63 = vld [vmem:[#allocation2 + $0x18] sm:$0xff]  ;;  %v305_v0 = vld [vmem:[#allocation2 + $0x8] sm:$0xff]  ;;  %v337_v6 = vld [vmem:[#allocation3] sm:$0xff] }
  0x4c   : > { %321 = vadd.xlane.f32.xlu1 %v320_v29  ;;  %v314_v39 = vadd.f32 %v313_v31, %v294_v26  ;;  %v362_v41 = vadd.f32 %v346_v33, %v345_v32  ;;  %v355_v42 = vmul.f32 %v302_v20, %v302_v20  ;;  %v358_v44 = vadd.f32 %v357_v27, %v343_v18  ;;  %v340_v11 = vld [vmem:[#allocation3 + $0x18] sm:$0xff]  ;;  %v339_v12 = vld [vmem:[#allocation3 + $0x10] sm:$0xff] }
  0x4d   : > { %311 = vadd.xlane.f32.xlu0 %v310_v34  ;;  %v325_v43 = vadd.f32 %v324_v36, %v303_v30  ;;  %v372_v45 = vadd.f32 %v354_v28, %v353_v21  ;;  %v367_v46 = vadd.f32 %v350_v9, %v349_v5  ;;  %v356_v50 = vmul.f32 %v303_v30, %v303_v30  ;;  %v338_v5 = vld [vmem:[#allocation3 + $0x8] sm:$0xff]  ;;  %v389_v28 = vld [vmem:[%s1297_s3] sm:$0xff] (!%p761_p7)  ;;  %v391_v31 = vld [vmem:[%s1297_s3 + $0x10] sm:$0xff] (!%p761_p7) }
  0x4e   : > { %v315_v47 = vadd.f32 %v314_v39, %v295_v37  ;;  %v363_v48 = vadd.f32 %v362_v41, %v347_v38  ;;  %v359_v53 = vadd.f32 %v358_v44, %v344_v35  ;;  %vm397_vm2 = vcmask (!%p761_p7), 261120   ;;  %v390_v30 = vld [vmem:[%s1297_s3 + $0x8] sm:$0xff] (!%p761_p7)  ;;  %v392_v32 = vld [vmem:[%s1297_s3 + $0x18] sm:$0xff] (!%p761_p7) }
  0x4f   : > { %v373_v51 = vadd.f32 %v372_v45, %v355_v42  ;;  %v368_v54 = vadd.f32 %v367_v46, %v351_v16  ;;  %798 = vmatprep.mubr.msk.f32.mxu0 (!%p761_p7), %vm397_vm2, %v389_v28  ;;  %812 = vmatprep.mubr.msk.f32.mxu1 (!%p761_p7), %vm397_vm2, %v389_v28 }
  0x50   : > { %326 = vadd.xlane.f32.xlu1 %v325_v43  ;;  %v364_v49 = vadd.f32 %v363_v48, %v348_v40 }
  0x51   : > { %316 = vadd.xlane.f32.xlu0 %v315_v47  ;;  %v374_v55 = vadd.f32 %v373_v51, %v356_v50  ;;  %v369_v56 = vadd.f32 %v368_v54, %v352_v52 }
  0x54   : > { %365 = vadd.xlane.f32.xlu1 %v364_v49 }
  0x55   : > { %360 = vadd.xlane.f32.xlu0 %v359_v53 }
  0x58   : > { %375 = vadd.xlane.f32.xlu1 %v374_v55 }
  0x59   : > { %370 = vadd.xlane.f32.xlu0 %v369_v56 }
  0xd9   : > { %v322_v59 = vpop.xlane.xlu1 %321 }
  0xda   : > { %v330_v60 = vadd.f32 %v322_v59, %v306_v57  ;;  %v312_v61 = vpop.xlane.xlu0 %311  ;;  %v605_v57 = vld [vmem:[%s1295_s1 + $0x8] sm:$0xff] (!%p761_p7) }
  0xdb   : > { %v328_v62 = vadd.f32 %v312_v61, %v304_v58  ;;  %v604_v58 = vld [vmem:[%s1295_s1] sm:$0xff] (!%p761_p7) }
  0xdc   : > { %335 = vst.msk [vmem:[#allocation2 + $0x10] sm:$0xff] %vm332_vm1, %v330_v60 }
  0xdd   : > { %333 = vst.msk [vmem:[#allocation2] sm:$0xff] %vm332_vm1, %v328_v62  ;;  %v327_v1 = vpop.xlane.xlu1 %326  ;;  %v617_v62 = vld [vmem:[%s1307_s29 + $0x8] sm:$0xff] (!%p761_p7) }
  0xde   : > { %v331_v2 = vadd.f32 %v327_v1, %v307_v63  ;;  %v317_v3 = vpop.xlane.xlu0 %316 }
  0xdf   : > { %v329_v4 = vadd.f32 %v317_v3, %v305_v0  ;;  %v607_v0 = vld [vmem:[%s1295_s1 + $0x18] sm:$0xff] (!%p761_p7)  ;;  %v606_v3 = vld [vmem:[%s1295_s1 + $0x10] sm:$0xff] (!%p761_p7) }
  0xe0   : > { %336 = vst.msk [vmem:[#allocation2 + $0x18] sm:$0xff] %vm332_vm1, %v331_v2  ;;  %v616_v2 = vld [vmem:[%s1307_s29] sm:$0xff] (!%p761_p7) }
  0xe1   : > { %334 = vst.msk [vmem:[#allocation2 + $0x8] sm:$0xff] %vm332_vm1, %v329_v4  ;;  %v366_v7 = vpop.xlane.xlu1 %365 }
  0xe2   : > { %v378_v8 = vadd.f32 %v366_v7, %v338_v5  ;;  %v361_v9 = vpop.xlane.xlu0 %360 }
  0xe3   : > { %v377_v10 = vadd.f32 %v361_v9, %v337_v6  ;;  %388 = sbr.rel (%p761_p7) target bundleno = 488 (0x1e8), region = 48  ;;  %v395_v22 = vld [vmem:[#allocation2 + $0x10] sm:$0xff] (!%p761_p7) }
  0xe4   : > { %382 = vst.msk [vmem:[#allocation3 + $0x8] sm:$0xff] %vm332_vm1, %v378_v8  ;;  %v393_v17 = vld [vmem:[#allocation2] sm:$0xff] (!%p761_p7) }
  0xe5   : > { %381 = vst.msk [vmem:[#allocation3] sm:$0xff] %vm332_vm1, %v377_v10  ;;  %v376_v13 = vpop.xlane.xlu1 %375  ;;  %v619_v10 = vld [vmem:[%s1307_s29 + $0x18] sm:$0xff] (!%p761_p7) }
  0xe6   : > { %v380_v14 = vadd.f32 %v376_v13, %v340_v11  ;;  %v371_v15 = vpop.xlane.xlu0 %370  ;;  %v618_v13 = vld [vmem:[%s1307_s29 + $0x10] sm:$0xff] (!%p761_p7) }
  0xe7   : > { %v379_v16 = vadd.f32 %v371_v15, %v339_v12  ;;  %v396_v23 = vld [vmem:[#allocation2 + $0x18] sm:$0xff] (!%p761_p7) }
  0xe8   : > { %384 = vst.msk [vmem:[#allocation3 + $0x18] sm:$0xff] %vm332_vm1, %v380_v14  ;;  %v394_v18 = vld [vmem:[#allocation2 + $0x8] sm:$0xff] (!%p761_p7)  ;;  %v822_v25 = vpack.c.bf16 (!%p761_p7), %v396_v23, %v395_v22 }
  0xe9   : > { %383 = vst.msk [vmem:[#allocation3 + $0x10] sm:$0xff] %vm332_vm1, %v379_v16  ;;  %v818_v20 = vpack.c.bf16 (!%p761_p7), %v394_v18, %v393_v17 }
  0xeb   : > { %v496_v21 = vld [vmem:[#allocation3 + $0x8] sm:$0xff]  ;;  %819 = vmatprep.subr.bf16.mxu0 %v818_v20 }
  0xec   : > { %v495_v19 = vld [vmem:[#allocation3] sm:$0xff]  ;;  %821 = vmatpush3.bf16.msra.mxu0 %v818_v20 }
  0xed   : > { %v826_v24 = vpack.c.bf16 %v496_v21, %v495_v19  ;;  %823 = vmatprep.subr.bf16.mxu0 %v822_v25 }
  0xef   : > { %v498_v27 = vld [vmem:[#allocation3 + $0x18] sm:$0xff]  ;;  %827 = vmatprep.subr.bf16.mxu1 %v826_v24 }
  0xf0   : > { %v497_v26 = vld [vmem:[#allocation3 + $0x10] sm:$0xff]  ;;  %829 = vmatpush3.bf16.msra.mxu1 %v826_v24  ;;  %825 = vmatpush3.bf16.msra.mxu0 %v822_v25 }
  0xf1   : > { %v830_v29 = vpack.c.bf16 %v498_v27, %v497_v26 }
  0xf3   : > { %831 = vmatprep.subr.bf16.mxu1 %v830_v29  ;;  %799 = vmatmul.mubr.msk.f32.vlgmr.msra.gmra.mrb[0].mxu0 %vm397_vm2, %v390_v30 }
  0xf4   : > { %833 = vmatpush3.bf16.msra.mxu1 %v830_v29  ;;  %801 = vmatprep.mubr.msk.f32.mxu0 %vm397_vm2, %v391_v31 }
  0xf7   : > { %813 = vmatmul.mubr.msk.f32.vlgmr.msra.gmra.mrb[0].mxu1 %vm397_vm2, %v390_v30  ;;  %802 = vmatmul.mubr.msk.f32.gmra.mrb[2].mxu0 %vm397_vm2, %v392_v32 }
  0xf8   : > { %815 = vmatprep.mubr.msk.f32.mxu1 %vm397_vm2, %v391_v31 }
  0xfb   : > { %816 = vmatmul.mubr.msk.f32.gmra.mrb[2].mxu1 %vm397_vm2, %v392_v32 }
 0x1c6   : > { %v800_v33 = vpop.f32.mrb[0].mxu0 }
 0x1c7   : > { %v585_v34 = vmul.f32 %v800_v33, %v800_v33  ;;  %v476_v35 = vpop.f32.mrb[1].mxu0 }
 0x1c8   : > { %v584_v37 = vmul.f32 %v476_v35, %v476_v35 }
 0x1ca   : > { %v814_v36 = vpop.f32.mrb[0].mxu1  ;;  %v803_v41 = vpop.f32.mrb[2].mxu0 }
 0x1cb   : > { %v565_v38 = vpop.f32.mrb[1].mxu1  ;;  %v589_v39 = vsub.f32 %v814_v36, %v585_v34  ;;  %v587_v43 = vmul.f32 %v803_v41, %v803_v41  ;;  %v486_v44 = vpop.f32.mrb[3].mxu0 }
 0x1cc   : > { %v588_v40 = vsub.f32 %v565_v38, %v584_v37  ;;  %v586_v47 = vmul.f32 %v486_v44, %v486_v44 }
 0x1cd   : > { %v593_v42 = vmax.f32 %v589_v39, 0.0 }
 0x1ce   : > { %v817_v45 = vpop.f32.mrb[2].mxu1  ;;  %v592_v46 = vmax.f32 %v588_v40, 0.0 }
 0x1cf   : > { %v575_v48 = vpop.f32.mrb[3].mxu1  ;;  %v597_v49 = vadd.f32 1e-05, %v593_v42  ;;  %v591_v50 = vsub.f32 %v817_v45, %v587_v43 }
 0x1d0   : > { %v596_v51 = vadd.f32 1e-05, %v592_v46  ;;  %v590_v52 = vsub.f32 %v575_v48, %v586_v47 }
 0x1d1   : > { %909 = vrsqrt.f32 %v597_v49  ;;  %v595_v53 = vmax.f32 %v591_v50, 0.0 }
 0x1d2   : > { %911 = vrsqrt.f32 %v596_v51  ;;  %v594_v54 = vmax.f32 %v590_v52, 0.0 }
 0x1d3   : > { %v599_v55 = vadd.f32 1e-05, %v595_v53 }
 0x1d4   : > { %v598_v56 = vadd.f32 1e-05, %v594_v54 }
 0x1d5   : > { %913 = vrsqrt.f32 %v599_v55 }
 0x1d6   : > { %915 = vrsqrt.f32 %v598_v56 }
 0x1db   : > { %v910_v59 = vpop.eup %909 }
 0x1dc   : > { %v912_v60 = vpop.eup %911  ;;  %v609_v61 = vmul.f32 %v910_v59, %v605_v57 }
 0x1dd   : > { %v608_v63 = vmul.f32 %v912_v60, %v604_v58 }
 0x1de   : > { %613 = vst.msk [vmem:[%s1177_s30 + $0x8] sm:$0xff] %vm332_vm1, %v609_v61  ;;  %v621_v1 = vmul.f32 %v800_v33, %v609_v61 }
 0x1df   : > { %v914_v4 = vpop.eup %913  ;;  %612 = vst.msk [vmem:[%s1177_s30] sm:$0xff] %vm332_vm1, %v608_v63  ;;  %v620_v5 = vmul.f32 %v608_v63, %v476_v35 }
 0x1e0   : > { %v916_v6 = vpop.eup %915  ;;  %v625_v7 = vsub.f32 %v617_v62, %v621_v1  ;;  %v611_v8 = vmul.f32 %v914_v4, %v607_v0 }
 0x1e1   : > { %v624_v9 = vsub.f32 %v616_v2, %v620_v5  ;;  %v610_v11 = vmul.f32 %v916_v6, %v606_v3 }
 0x1e2   : > { %629 = vst.msk [vmem:[%s1182_s14 + $0x8] sm:$0xff] %vm332_vm1, %v625_v7  ;;  %615 = vst.msk [vmem:[%s1177_s30 + $0x18] sm:$0xff] %vm332_vm1, %v611_v8  ;;  %v623_v12 = vmul.f32 %v803_v41, %v611_v8 }
 0x1e3   : > { %628 = vst.msk [vmem:[%s1182_s14] sm:$0xff] %vm332_vm1, %v624_v9  ;;  %614 = vst.msk [vmem:[%s1177_s30 + $0x10] sm:$0xff] %vm332_vm1, %v610_v11  ;;  %v622_v14 = vmul.f32 %v610_v11, %v486_v44 }
 0x1e4   : > { %v627_v15 = vsub.f32 %v619_v10, %v623_v12 }
 0x1e5   : > { %v626_v16 = vsub.f32 %v618_v13, %v622_v14 }
 0x1e6   : > { %631 = vst.msk [vmem:[%s1182_s14 + $0x18] sm:$0xff] %vm332_vm1, %v627_v15 }
 0x1e7   : > { %630 = vst.msk [vmem:[%s1182_s14 + $0x10] sm:$0xff] %vm332_vm1, %v626_v16 }
 0x1e8 PF: > { %s19_s25 = sadd.s32 1, %s1013_s25   ;;  %s1308_s27 = sld [smem:[#allocation7_spill]] }
 0x1e9   : > { %p16_p6 = scmp.ge.s32.totalorder %s19_s25, 6   ;;  %s1309_s18 = smov %s989_s19 }
 0x1ea   : > { %s1310_s19 = smov %s993_s20  ;;  %s1311_s20 = smov %s1117_s13 }
 0x1eb   : > { %s1312_s21 = smov %s1005_s23  ;;  %s1313_s22 = smov %s1009_s24 }
 0x1ec   : > { %s1315_s24 = smov %s1321_s28  ;;  %18 = sbr.rel (!%p16_p6) target bundleno = 7 (0x7), region = 96 }
 0x1ee   : > { %s1314_s23 = smov %s1308_s27 }
 0x1f3   :  { %669 = vsyncpa [#allocation5], 1 }
 0x1f4   :  { %671 = vsyncpa [#allocation5 + $0x1], 1 }

</bundles_post_ra>
